<compile_context>
chip_gen: v7x
topology: tpu7x:2x2x1
jax: 0.10.0
libtpu: 0.0.40
codegen_flags: <defaults>
</compile_context>

<pallas_src>
import jax
import jax.numpy as jnp
from jax.experimental import pallas as pl
from jax.experimental.pallas import tpu as pltpu


# ---------------------------------------------------------------------------
# Single fused kernel: matmul + bias + sigmoid on whole-array VMEM refs
# ---------------------------------------------------------------------------
def fused_matmul_bias_sigmoid_kernel(x_ref, w_ref, b_ref, o_ref):
    # x_ref: (B, F)   w_ref: (F, O)   b_ref: (1, O)   o_ref: (B, O)
    y = jnp.dot(x_ref[...], w_ref[...], preferred_element_type=jnp.float32)
    o_ref[...] = jax.nn.sigmoid(y + b_ref[...]).astype(o_ref.dtype)


def fused_forward(x_flat, w_eff, b_eff):
    B, F = x_flat.shape
    O = w_eff.shape[1]
    cost = pl.CostEstimate(
        flops=2 * B * F * O,
        transcendentals=B * O,
        bytes_accessed=(B * F + F * O + O + B * O) * 4,
    )
    return pl.pallas_call(
        fused_matmul_bias_sigmoid_kernel,
        out_shape=jax.ShapeDtypeStruct((B, O), jnp.float32),
        in_specs=[
            pl.BlockSpec(memory_space=pltpu.MemorySpace.VMEM),
            pl.BlockSpec(memory_space=pltpu.MemorySpace.VMEM),
            pl.BlockSpec(memory_space=pltpu.MemorySpace.VMEM),
        ],
        out_specs=pl.BlockSpec(memory_space=pltpu.MemorySpace.VMEM),
        cost_estimate=cost,
    )(x_flat, w_eff, b_eff)


# ---------------------------------------------------------------------------
# One-time constant fold of conv1 + pad + flatten + fc into a single matmul.
# Takes parameters in PyTorch layouts and transposes explicitly.
# ---------------------------------------------------------------------------
def fold_params(conv1_w, conv1_b, fc_w, fc_b, H, W):
    """conv1_w: (Cout, Cin, 1, 1), conv1_b: (Cout,),
       fc_w: (F_out, F_in), fc_b: (F_out,)   -- PyTorch layouts."""
    Cout, Cin, kh, kw = conv1_w.shape
    assert (kh, kw) == (1, 1), (kh, kw)
    F_out, F_in = fc_w.shape
    Hp, Wp = H + 2, W + 2
    assert F_in == Cout * Hp * Wp, (F_in, Cout, Hp, Wp)

    w1 = conv1_w.reshape(Cout, Cin).T          # (Cin, Cout)
    wfc = fc_w.T                               # (F_in, F_out)

    wfc_r = wfc.reshape(Cout, Hp, Wp, F_out)   # NCHW-flatten order of fc rows
    wfc_interior = wfc_r[:, 1:1 + H, 1:1 + W, :]   # rows that see real pixels

    # W_eff[(cin,h,w), o] = sum_cout w1[cin,cout] * wfc_interior[cout,h,w,o]
    w_eff = jnp.einsum("ic,chwo->ihwo", w1, wfc_interior).reshape(Cin * H * W, F_out)
    # padding=1 border of a 1x1 conv contributes only the conv bias -> fold into b_eff
    b_eff = fc_b.reshape(-1) + jnp.einsum("c,chwo->o", conv1_b, wfc_r)

    return w_eff.astype(jnp.float32), b_eff.reshape(1, F_out).astype(jnp.float32)


def model_forward(x, w_eff, b_eff):
    # x: (B, Cin, H, W) NCHW; flatten is contiguous so the reshape is free.
    B = x.shape[0]
    x_flat = x.reshape(B, -1)
    return fused_forward(x_flat, w_eff, b_eff)     # (B, 16), no post-kernel slice


# ---------------------------------------------------------------------------
# Pure-JAX reference of the original PyTorch forward (for correctness check)
# ---------------------------------------------------------------------------
def reference_forward(x, conv1_w, conv1_b, fc_w, fc_b):
    x_pad = jnp.pad(x, ((0, 0), (0, 0), (1, 1), (1, 1)))
    w1 = conv1_w.reshape(conv1_w.shape[0], conv1_w.shape[1])    # (Cout, Cin)
    y = jnp.einsum("bchw,oc->bohw", x_pad, w1) + conv1_b[None, :, None, None]
    v2 = y.reshape(x.shape[0], -1)
    v3 = v2 @ fc_w.T + fc_b[None, :]
    return jax.nn.sigmoid(v3)


if __name__ == "__main__":
    key = jax.random.PRNGKey(0)
    kx, k1, k2, k3, k4 = jax.random.split(key, 5)

    # Shapes chosen so the original module is self-consistent:
    # conv1(pad=1) out (B, 8, 8, 9) -> flatten 8*8*9 = 576 = 16*6*6 fc input.
    B, Cin, H, W = 2, 3, 6, 7
    Cout = 8
    F_in, F_out = 16 * 6 * 6, 16

    x = jax.random.normal(kx, (B, Cin, H, W), dtype=jnp.float32)

    # Parameters in the exact PyTorch layouts.
    conv1_w = jax.random.normal(k1, (Cout, Cin, 1, 1), dtype=jnp.float32) * 0.2
    conv1_b = jax.random.normal(k2, (Cout,), dtype=jnp.float32) * 0.1
    fc_w = jax.random.normal(k3, (F_out, F_in), dtype=jnp.float32) * 0.05
    fc_b = jax.random.normal(k4, (F_out,), dtype=jnp.float32) * 0.1

    # One-time constant fold (weights are static; off the per-call hot path).
    w_eff, b_eff = fold_params(conv1_w, conv1_b, fc_w, fc_b, H, W)

    out = model_forward(x, w_eff, b_eff)
    out = jax.block_until_ready(out)
    assert out.shape == (B, F_out), out.shape

    ref = reference_forward(x, conv1_w, conv1_b, fc_w, fc_b)
    err = float(jnp.max(jnp.abs(out - ref)))
    assert jnp.allclose(out, ref, rtol=1e-5, atol=1e-5), err

    print("KERNEL_OK")
</pallas_src>

<mosaic_0001>
module attributes {stable_mosaic.version = 11 : i64} {
  func.func @fused_matmul_bias_sigmoid_kernel(%arg0: memref<2x126xf32, #tpu.memory_space<vmem>>, %arg1: memref<126x16xf32, #tpu.memory_space<vmem>>, %arg2: memref<1x16xf32, #tpu.memory_space<vmem>>, %arg3: memref<2x16xf32, #tpu.memory_space<vmem>>) attributes {dimension_semantics = [], scalar_prefetch = 0 : i64, scratch_operands = 0 : i64, tpu.core_type = #tpu.core_type<tc>} {
    %c0 = arith.constant 0 : index
    %c0_0 = arith.constant 0 : index
    %0 = vector.load %arg0[%c0, %c0_0] : memref<2x126xf32, #tpu.memory_space<vmem>>, vector<2x126xf32>
    %c0_1 = arith.constant 0 : index
    %c0_2 = arith.constant 0 : index
    %1 = vector.load %arg1[%c0_1, %c0_2] : memref<126x16xf32, #tpu.memory_space<vmem>>, vector<126x16xf32>
    %cst = arith.constant dense<0.000000e+00> : vector<2x16xf32>
    %2 = tpu.matmul %0, %1, %cst {dimension_numbers = #tpu.dot_dimension_numbers<[1], [0], [0], [1], [0, 0, 1, 1], [], []>} : vector<2x126xf32>, vector<126x16xf32>, vector<2x16xf32> -> vector<2x16xf32>
    %c0_3 = arith.constant 0 : index
    %c0_4 = arith.constant 0 : index
    %3 = vector.load %arg2[%c0_3, %c0_4] : memref<1x16xf32, #tpu.memory_space<vmem>>, vector<1x16xf32>
    %4 = vector.broadcast %3 : vector<1x16xf32> to vector<2x16xf32>
    %5 = arith.addf %2, %4 : vector<2x16xf32>
    %6 = arith.negf %5 : vector<2x16xf32>
    %7 = math.exp %6 : vector<2x16xf32>
    %cst_5 = arith.constant 1.000000e+00 : f32
    %8 = vector.broadcast %cst_5 : f32 to vector<2x16xf32>
    %9 = arith.addf %8, %7 : vector<2x16xf32>
    %10 = arith.divf %8, %9 : vector<2x16xf32>
    %c0_6 = arith.constant 0 : index
    %c0_7 = arith.constant 0 : index
    %11 = vector.load %arg3[%c0_6, %c0_7] : memref<2x16xf32, #tpu.memory_space<vmem>>, vector<2x16xf32>
    tpu.vector_store %arg3[%c0_6, %c0_7], %10 {strides = array<i32>} : memref<2x16xf32, #tpu.memory_space<vmem>>, vector<2x16xf32>,
    return
  }
}

</mosaic_0001>

<bundles_post_ra>
// kernel: tpu_custom_call.1
= control target key start
LH: loop header
LB: loop body
LE: loop exit
PB: predicated region body
PF: predicated region fallthrough
CT: control target
= control target key end

     0   :  { %v253_v3 = vmov 0.0|0.0   ;;  %vm254_vm0 = vmmov 0   ;;  %v255_v6 = vmov 0.0   ;;  %s344_s0 = inlined_call_operand.vmem [shape: f32[2,126], index: 0, kind: input, shape index: {}]   ;;  %s345_s1 = inlined_call_operand.vmem [shape: f32[126,16], index: 1, kind: input, shape index: {}]   ;;  %s346_s2 = inlined_call_operand.vmem [shape: f32[1,16], index: 2, kind: input, shape index: {}]   ;;  %s347_s3 = inlined_call_operand.hbm [shape: f32[2,16], index: 3, kind: output, shape index: {}]  }
   0x1   :  { %v16_v0 = vld [vmem:[%s345_s1] sm:$0xff]  ;;  %v17_v1 = vld [vmem:[%s345_s1 + $0x8] sm:$0xff]  ;;  %v18_v2 = vld [vmem:[%s345_s1 + $0x10] sm:$0xff]  ;;  %195 = vmatprep.subr.bf16.mxu0 %v253_v3  ;;  %192 = vmatprep.mubr.msk.f32.mxu0 %vm254_vm0, %v255_v6 }
   0x2   :  { %v196_v4 = vpack.c.bf16 %v17_v1, %v16_v0  ;;  %v19_v5 = vld [vmem:[%s345_s1 + $0x18] sm:$0xff]  ;;  %v20_v8 = vld [vmem:[%s345_s1 + $0x20] sm:$0xff]  ;;  %v21_v9 = vld [vmem:[%s345_s1 + $0x28] sm:$0xff] }
   0x3   :  { %v199_v7 = vpack.c.bf16 %v19_v5, %v18_v2 }
   0x4   :  { %197 = vmatpush3.bf16.msra.mxu0 %v196_v4 }
   0x5   :  { %198 = vmatprep.subr.bf16.mxu0 %v253_v3 }
   0x6   :  { %8 = vsyncpa [#allocation3], 0  ;;  %v202_v10 = vpack.c.bf16 %v21_v9, %v20_v8  ;;  %v22_v11 = vld [vmem:[%s345_s1 + $0x30] sm:$0xff]  ;;  %v23_v12 = vld [vmem:[%s345_s1 + $0x38] sm:$0xff]  ;;  %vm43_vm1 = vcmask 1045504   ;;  %vm256_vm2 = vmmov 1  }
   0x7   :  { %v205_v13 = vpack.c.bf16 %v23_v12, %v22_v11  ;;  %v24_v14 = vld [vmem:[%s345_s1 + $0x40] sm:$0xff]  ;;  %v25_v15 = vld [vmem:[%s345_s1 + $0x48] sm:$0xff]  ;;  %v26_v17 = vld [vmem:[%s345_s1 + $0x50] sm:$0xff]  ;;  %vm39_vm4 = vcmask 1031168   ;;  %vm123_vm5 = vcmask 123904  }
   0x8   :  { %200 = vmatpush3.bf16.msra.mxu0 %v199_v7  ;;  %v208_v16 = vpack.c.bf16 %v25_v15, %v24_v14  ;;  %v27_v18 = vld [vmem:[%s345_s1 + $0x58] sm:$0xff]  ;;  %v28_v20 = vld [vmem:[%s345_s1 + $0x60] sm:$0xff]  ;;  %v29_v21 = vld [vmem:[%s345_s1 + $0x68] sm:$0xff] }
   0x9   :  { %201 = vmatprep.subr.bf16.mxu0 %v253_v3  ;;  %v211_v19 = vpack.c.bf16 %v27_v18, %v26_v17  ;;  %v214_v22 = vpack.c.bf16 %v29_v21, %v28_v20  ;;  %v30_v23 = vld [vmem:[%s345_s1 + $0x70] sm:$0xff]  ;;  %v31_v24 = vld [vmem:[%s345_s1 + $0x78] sm:$0x3f]  ;;  %vm218_vm3 = vmpackc.low %vm43_vm1, %vm256_vm2  ;;  %s257_s1 = smov [#allocation2]  }
   0xa   :  { %v217_v25 = vpack.c.bf16 %v31_v24, %v30_v23  ;;  %v15_v26 = vld [vmem:[%s344_s0] sm:$0x3]  ;;  %s131_s21 = sshll.u32 %s257_s1, 4  ;;  %s132_s21 = int_to_ptr.vmem [resolvable:$true] %s131_s21 }
   0xb   :  { %v139_v27 = vld [vmem:[%s346_s2] ss:$0 sm:$0xff]  ;;  %s229_s0 = scalar_lea.vmem %s132_s21, 32  ;;  %p234_p1 = scmp.lt.s32.totalorder %s132_s21, %s132_s21 }
   0xc   :  { %203 = vmatpush3.bf16.msra.mxu0 %v202_v10  ;;  %p230_p0 = scmp.ne.s32.totalorder %s132_s21, %s229_s0  ;;  %p235_p2 = scmp.lt.s32.totalorder %s229_s0, %s229_s0 }
   0xd   :  { %204 = vmatprep.subr.bf16.mxu0 %v253_v3 }
   0xe   :  { %p236_p3 = por %p235_p2, %p234_p1 }
  0x10   :  { %206 = vmatpush3.bf16.msra.mxu0 %v205_v13  ;;  %p237_p4 = pnand %p236_p3, %p230_p0 }
  0x11   :  { %207 = vmatprep.subr.bf16.mxu0 %v253_v3 }
  0x14   :  { %209 = vmatpush3.bf16.msra.mxu0 %v208_v16 }
  0x15   :  { %210 = vmatprep.subr.bf16.mxu0 %v253_v3 }
  0x18   :  { %212 = vmatpush3.bf16.msra.mxu0 %v211_v19 }
  0x19   :  { %213 = vmatprep.subr.bf16.mxu0 %v253_v3 }
  0x1c   :  { %215 = vmatpush3.bf16.msra.mxu0 %v214_v22 }
  0x1d   :  { %216 = vmatprep.subr.bf16.mxu0 %v253_v3 }
  0x20   :  { %219 = vmatpush3.bf16.msk.msra.mxu0 %vm218_vm3, %v217_v25 }
  0x23   :  { %193 = vmatmul.mubr.msk.f32.vlgmr.msra.gmra.mrb[0].mxu0 %vm39_vm4, %v15_v26 }
  0xf6   :  { %v113_v28 = vpop.f32.mrb[0].mxu0 }
  0xf7   :  { %v114_v29 = vadd.f32 %v139_v27, %v113_v28  ;;  %v194_v30 = vpop.f32.mrb[1].mxu0 }
  0xf9   :  { %v142_v31 = vmul.f32 -1.442695, %v114_v29 }
  0xfb   :  { %225 = vpow2.f32 %v142_v31 }
 0x105   :  { %v226_v32 = vpop.eup %225 }
 0x106   :  { %v120_v33 = vadd.f32 1.0, %v226_v32 }
 0x108   :  { %227 = vrcp.f32 %v120_v33 }
 0x112   :  { %v228_v34 = vpop.eup %227 }
 0x113   :  { %124 = vst.msk [vmem:[#allocation2] sm:$0x3] %vm123_vm5, %v228_v34 }
 0x114   :  { %240 = shalt.err (!%p237_p4)
}
 0x115   :  { %s241_s23 = scalar_lea.hbm %s347_s3, 32 }
 0x116   :  { %p242_p5 = scmp.ne.s32.totalorder %s347_s3, %s241_s23  ;;  %p245_p6 = scmp.lt.u32.totalorder %s241_s23, %s347_s3 }
 0x118   :  { %p247_p7 = pnand %p245_p6, %p242_p5 }
 0x11a   :  { %250 = shalt.err (!%p247_p7)
}
 0x11b   :  { %134 = dma.vmem_to_hbm [thread:$0]  %s132_s21, 32, %s347_s3, [#allocation3]  }
 0x11c   :  { %251 = dma.done.wait [#allocation3], 32  }
 0x11d   :  { %252 = vsyncadd [#allocation3], 4294967264 }
 0x11e   :  { %138 = vsyncpa [#allocation3], 1 }

</bundles_post_ra>
